<compile_context>
chip_gen: v6e
topology: v6e:2x2x1
jax: 0.10.0
libtpu: 0.0.40
codegen_flags: <defaults>
</compile_context>

<pallas_src>
import functools
import numpy as np
import jax
import jax.numpy as jnp
from jax import lax
from jax.experimental import pallas as pl
from jax.experimental.pallas import tpu as pltpu

# ---- ContrastLoss.__init__ defaults (no learnable parameters) ----
MAX_SAMPLE = 1024
THRESHOLD = 100
FEAT_LOSS_WEIGHT = 0.1
MASK_LOSS_WEIGHT = 0.1
TEMPERATURE = 0.1
BASE_TEMPERATURE = 0.07
IGNORE_INDEX = 255


# ---------------------------------------------------------------------------
# Block-size helpers (generation-aware VMEM budgeting)
# ---------------------------------------------------------------------------
def _lane_block_cap_bytes():
    """~4 MiB blocks on 128 MiB-VMEM chips (v5e/v6e), ~2 MiB on 64 MiB (v7x)."""
    vmem = 64 * 1024 * 1024
    try:
        info = pltpu.get_tpu_info()
        vmem = int(getattr(info, "vmem_capacity_bytes", vmem))
    except Exception:
        pass
    return (4 << 20) if vmem >= (100 << 20) else (2 << 20)


def _pick_lane_block(n, c, cap_bytes):
    """Largest 128-multiple lane block <= cap_bytes (f32), or full n if it fits."""
    per_lane = 4 * max(int(c), 1)
    max_bn = max(128, (cap_bytes // per_lane) // 128 * 128)
    return n if n <= max_bn else max_bn


def _elementwise_vmem_limit(bn, c):
    blk = 4 * max(int(c), 1) * int(bn)
    return int(min(48 << 20, max(16 << 20, 6 * blk)))


def _pad_rows(x, m_pad, value=0):
    m = x.shape[0]
    if m == m_pad:
        return x
    cfg = [(0, m_pad - m)] + [(0, 0)] * (x.ndim - 1)
    return jnp.pad(x, cfg, constant_values=value)


# ---------------------------------------------------------------------------
# Kernel 1: softmax over classes -> argmax (on raw logits) + prob-at-gt-class.
# Lane-dense view [B, Cls, N]: class = sublane axis, spatial = lane axis.
# Only [B,1,N] outputs are written (no full [B,Cls,N] prob writeback).
# ---------------------------------------------------------------------------
def _softmax_argmax_kernel(x_ref, lbl_ref, pgt_ref, pred_ref):
    x = x_ref[0].astype(jnp.float32)                   # [Cls, bn]
    lbl = lbl_ref[0]                                   # [1, bn] i32
    ncls = x.shape[0]
    m = jnp.max(x, axis=0, keepdims=True)
    e = jnp.exp(x - m)
    s = jnp.sum(e, axis=0, keepdims=True)
    inv_s = 1.0 / s                                    # one divide per lane
    cls_idx = lax.broadcasted_iota(jnp.int32, x.shape, 0)
    # first-occurrence argmax on raw logits (robust vs. post-division ties)
    cand = jnp.where(x == m, cls_idx, ncls)
    pred_ref[0] = jnp.min(cand, axis=0, keepdims=True).astype(jnp.int32)
    # softmax probability at the ground-truth class only
    e_gt = jnp.sum(jnp.where(cls_idx == lbl, e, 0.0), axis=0, keepdims=True)
    pgt_ref[0] = e_gt * inv_s


def softmax_argmax_gt(x_bcn, gt_bn):
    """x_bcn [B,Cls,N], gt_bn [B,N] -> (prob_at_gt [B,N] f32, pred [B,N] i32)."""
    B, Cls, N = x_bcn.shape
    bn = _pick_lane_block(N, Cls, _lane_block_cap_bytes())
    grid = (B, pl.cdiv(N, bn))
    lbl = gt_bn.reshape(B, 1, N).astype(jnp.int32)
    pgt, pred = pl.pallas_call(
        _softmax_argmax_kernel,
        out_shape=(jax.ShapeDtypeStruct((B, 1, N), jnp.float32),
                   jax.ShapeDtypeStruct((B, 1, N), jnp.int32)),
        grid=grid,
        in_specs=[pl.BlockSpec((1, Cls, bn), lambda b, j: (b, 0, j)),
                  pl.BlockSpec((1, 1, bn), lambda b, j: (b, 0, j))],
        out_specs=(pl.BlockSpec((1, 1, bn), lambda b, j: (b, 0, j)),
                   pl.BlockSpec((1, 1, bn), lambda b, j: (b, 0, j))),
        compiler_params=pltpu.CompilerParams(
            dimension_semantics=("parallel", "parallel"),
            vmem_limit_bytes=_elementwise_vmem_limit(bn, Cls)),
    )(x_bcn, lbl)
    return pgt[:, 0, :], pred[:, 0, :]


# ---------------------------------------------------------------------------
# Kernel 2: channel L2 normalization (F.normalize dim=1, eps=1e-12), lane-dense.
# ---------------------------------------------------------------------------
def _l2norm_kernel(x_ref, o_ref):
    x = x_ref[0].astype(jnp.float32)                   # [C, bn]
    ss = jnp.sum(x * x, axis=0, keepdims=True)
    inv = lax.rsqrt(jnp.maximum(ss, 1e-24))            # == 1/max(||x||, 1e-12)
    o_ref[0] = x * inv


def l2_normalize_channels(x_gcn):
    G, C, N = x_gcn.shape
    bn = _pick_lane_block(N, C, _lane_block_cap_bytes())
    grid = (G, pl.cdiv(N, bn))
    return pl.pallas_call(
        _l2norm_kernel,
        out_shape=jax.ShapeDtypeStruct((G, C, N), jnp.float32),
        grid=grid,
        in_specs=[pl.BlockSpec((1, C, bn), lambda g, j: (g, 0, j))],
        out_specs=pl.BlockSpec((1, C, bn), lambda g, j: (g, 0, j)),
        compiler_params=pltpu.CompilerParams(
            dimension_semantics=("parallel", "parallel"),
            vmem_limit_bytes=_elementwise_vmem_limit(bn, C)),
    )(x_gcn)


# ---------------------------------------------------------------------------
# Kernel 3: feat_contrastive, row-tiled.  Per-row loss output; sum in wrapper.
# Denominator = off-diagonal exp-sum (SupCon style, matches torch reference).
# ---------------------------------------------------------------------------
def _feat_contrast_kernel(a_ref, keys_ref, lab_c_ref, lab_r_ref, out_ref):
    a = a_ref[...]                                     # [tm, C] bf16
    keys = keys_ref[...]                               # [M, C] bf16
    lab_c = lab_c_ref[...]                             # [tm, 1] i32
    lab_r = lab_r_ref[...]                             # [1, M] i32
    tm, M = a.shape[0], keys.shape[0]

    row0 = pl.program_id(0) * tm
    rows = row0 + lax.broadcasted_iota(jnp.int32, (tm, M), 0)
    cols = lax.broadcasted_iota(jnp.int32, (tm, M), 1)
    diag = rows == cols
    valid_col = lab_r >= 0
    valid_row = lab_c >= 0
    eq = jnp.logical_and(lab_c == lab_r, valid_col)

    dn = (((1,), (1,)), ((), ()))
    logits = lax.dot_general(a, keys, dn,
                             preferred_element_type=jnp.float32) * (1.0 / TEMPERATURE)
    m = jnp.max(jnp.where(valid_col, logits, jnp.float32(-1e30)),
                axis=1, keepdims=True)
    logits = logits - m

    off_diag_valid = jnp.logical_and(valid_col, jnp.logical_not(diag))
    den = jnp.sum(jnp.where(off_diag_valid, jnp.exp(logits), 0.0),
                  axis=1, keepdims=True)
    log_den = jnp.log(den + 1e-16)

    pos = jnp.logical_and(eq, jnp.logical_not(diag))
    pos_cnt = jnp.sum(jnp.where(pos, 1.0, 0.0), axis=1, keepdims=True)
    pos_logit_sum = jnp.sum(jnp.where(pos, logits, 0.0), axis=1, keepdims=True)
    # sum(pos * log_prob) == sum(pos * logits) - sum(pos) * log_den
    mean_log_prob_pos = (pos_logit_sum - pos_cnt * log_den) / (pos_cnt + 1e-16)
    loss = -(TEMPERATURE / BASE_TEMPERATURE) * mean_log_prob_pos       # [tm, 1]
    out_ref[...] = jnp.where(valid_row, loss, 0.0)


def feat_contrastive(features, labels):
    M, C = features.shape
    m_pad = max(128, ((M + 127) // 128) * 128)         # bucketed -> bounded recompiles
    tm = min(256, m_pad)
    feats_p = _pad_rows(features.astype(jnp.bfloat16), m_pad)
    lab_p = _pad_rows(labels.reshape(M, 1).astype(jnp.int32), m_pad, value=-1)
    lab_row = lab_p.reshape(1, m_pad)
    out = pl.pallas_call(
        _feat_contrast_kernel,
        out_shape=jax.ShapeDtypeStruct((m_pad, 1), jnp.float32),
        grid=(m_pad // tm,),
        in_specs=[
            pl.BlockSpec((tm, C), lambda i: (i, 0)),           # anchor row tile
            pl.BlockSpec((m_pad, C), lambda i: (0, 0)),        # all keys, resident
            pl.BlockSpec((tm, 1), lambda i: (i, 0)),           # tile labels
            pl.BlockSpec((1, m_pad), lambda i: (0, 0)),        # all labels (columns)
        ],
        out_specs=pl.BlockSpec((tm, 1), lambda i: (i, 0)),
        compiler_params=pltpu.CompilerParams(
            dimension_semantics=("parallel",),
            vmem_limit_bytes=24 * 1024 * 1024),
    )(feats_p, feats_p, lab_p, lab_row)
    return (jnp.sum(out[:, 0]) / M) * FEAT_LOSS_WEIGHT


# ---------------------------------------------------------------------------
# Kernel 4: mask_contrastive, row-tiled + online single pass over key blocks.
# Keys are [anchors ; torch's flatten(0,1) key rows] padded per block to m_pad;
# every M-wide column block pairs with the tiled eq label (torch repeat(1,K)).
# Denominator = negatives-only (plus diagonal), matching the torch reference.
# ---------------------------------------------------------------------------
def _mask_contrast_kernel(a_ref, keys_ref, lab_c_ref, lab_r_ref, out_ref,
                          *, num_blocks):
    a = a_ref[...]                                     # [tm, Cm] bf16
    lab_c = lab_c_ref[...]                             # [tm, 1] i32
    lab_r = lab_r_ref[...]                             # [1, M] i32
    tm = a.shape[0]
    M = lab_r.shape[1]
    inv_t = 1.0 / TEMPERATURE
    neg_inf = jnp.float32(-1e30)
    dn = (((1,), (1,)), ((), ()))

    row0 = pl.program_id(0) * tm
    rows = row0 + lax.broadcasted_iota(jnp.int32, (tm, M), 0)
    cols = lax.broadcasted_iota(jnp.int32, (tm, M), 1)
    diag = rows == cols
    valid_col = lab_r >= 0
    valid_row = lab_c >= 0
    eq = jnp.logical_and(lab_c == lab_r, valid_col)

    # loop-invariant positive count: block0 uses eq&~diag, blocks 1..K use eq
    eq_cnt = jnp.sum(jnp.where(eq, 1.0, 0.0), axis=1, keepdims=True)
    tot_cnt = num_blocks * eq_cnt - 1.0
    neg_mask_rest = jnp.logical_and(valid_col, jnp.logical_not(eq))   # hoisted

    def block_logits(start):
        kb = keys_ref[pl.ds(start, M), :]              # [M, Cm] bf16
        return lax.dot_general(a, kb, dn,
                               preferred_element_type=jnp.float32) * inv_t

    # ---- block 0 (anchor vs anchor); denominator includes the diagonal ----
    lg0 = block_logits(0)
    m = jnp.max(jnp.where(valid_col, lg0, neg_inf), axis=1, keepdims=True)
    tot0 = jnp.logical_and(eq, jnp.logical_not(diag))
    neg0 = jnp.logical_and(valid_col, jnp.logical_not(tot0))
    neg_sum = jnp.sum(jnp.where(neg0, jnp.exp(lg0 - m), 0.0),
                      axis=1, keepdims=True)
    tot_logit_sum = jnp.sum(jnp.where(tot0, lg0, 0.0), axis=1, keepdims=True)

    # ---- blocks 1..K: online max / rescaled neg_sum, un-shifted logit sums ----
    def body(b, carry):
        m_old, nsum, lsum = carry
        lg = block_logits(pl.multiple_of(b * M, 128))
        m_new = jnp.maximum(m_old, jnp.max(jnp.where(valid_col, lg, neg_inf),
                                           axis=1, keepdims=True))
        alpha = jnp.exp(m_old - m_new)
        nsum = nsum * alpha + jnp.sum(
            jnp.where(neg_mask_rest, jnp.exp(lg - m_new), 0.0),
            axis=1, keepdims=True)
        lsum = lsum + jnp.sum(jnp.where(eq, lg, 0.0), axis=1, keepdims=True)
        return m_new, nsum, lsum

    m, neg_sum, tot_logit_sum = lax.fori_loop(
        1, num_blocks, body, (m, neg_sum, tot_logit_sum))

    log_den = jnp.log(neg_sum + 1e-16)
    mean_log_prob = (tot_logit_sum - tot_cnt * (m + log_den)) / (tot_cnt + 1e-16)
    loss = -(TEMPERATURE / BASE_TEMPERATURE) * mean_log_prob           # [tm, 1]
    out_ref[...] = jnp.where(valid_row, loss, 0.0)


def mask_contrastive(mask_anchors, mask_keys, labels):
    M, K, Cm = mask_keys.shape
    m_pad = max(128, ((M + 127) // 128) * 128)
    tm = min(256, m_pad)
    num_blocks = K + 1
    # torch: cat([anchors, mask_keys.flatten(0,1)], 0); pad each M-row block to m_pad
    flat = mask_keys.reshape(M * K, Cm)
    blocks = [_pad_rows(mask_anchors.astype(jnp.bfloat16), m_pad)]
    for b in range(K):
        blocks.append(_pad_rows(flat[b * M:(b + 1) * M].astype(jnp.bfloat16), m_pad))
    all_keys = jnp.concatenate(blocks, axis=0)         # [(K+1)*m_pad, Cm]
    anch_p = _pad_rows(mask_anchors.astype(jnp.bfloat16), m_pad)
    lab_p = _pad_rows(labels.reshape(M, 1).astype(jnp.int32), m_pad, value=-1)
    lab_row = lab_p.reshape(1, m_pad)
    out = pl.pallas_call(
        functools.partial(_mask_contrast_kernel, num_blocks=num_blocks),
        out_shape=jax.ShapeDtypeStruct((m_pad, 1), jnp.float32),
        grid=(m_pad // tm,),
        in_specs=[
            pl.BlockSpec((tm, Cm), lambda i: (i, 0)),
            pl.BlockSpec((num_blocks * m_pad, Cm), lambda i: (0, 0)),
            pl.BlockSpec((tm, 1), lambda i: (i, 0)),
            pl.BlockSpec((1, m_pad), lambda i: (0, 0)),
        ],
        out_specs=pl.BlockSpec((tm, 1), lambda i: (i, 0)),
        compiler_params=pltpu.CompilerParams(
            dimension_semantics=("parallel",),
            vmem_limit_bytes=24 * 1024 * 1024),
    )(anch_p, all_keys, lab_p, lab_row)
    return (jnp.sum(out[:, 0]) / M) * MASK_LOSS_WEIGHT


# ---------------------------------------------------------------------------
# Glue: interpolation (JAX) and hard-sample mining (host -> indices only)
# ---------------------------------------------------------------------------
def nearest_interp(x, out_h, out_w):
    # PyTorch mode='nearest': src = floor(dst * in/out)
    _, _, Hin, Win = x.shape
    if Hin == out_h and Win == out_w:
        return x
    yi = jnp.minimum(jnp.floor(jnp.arange(out_h) * (Hin / out_h)).astype(jnp.int32), Hin - 1)
    xi = jnp.minimum(jnp.floor(jnp.arange(out_w) * (Win / out_w)).astype(jnp.int32), Win - 1)
    return x[:, :, yi, :][:, :, :, xi]


def bilinear_align_corners(x, out_h, out_w):
    _, _, Hin, Win = x.shape
    if Hin == out_h and Win == out_w:
        return x
    ys = jnp.linspace(0.0, Hin - 1.0, out_h) if out_h > 1 else jnp.zeros((out_h,), jnp.float32)
    xs = jnp.linspace(0.0, Win - 1.0, out_w) if out_w > 1 else jnp.zeros((out_w,), jnp.float32)
    y0 = jnp.clip(jnp.floor(ys), 0, Hin - 1).astype(jnp.int32)
    x0 = jnp.clip(jnp.floor(xs), 0, Win - 1).astype(jnp.int32)
    y1 = jnp.minimum(y0 + 1, Hin - 1)
    x1 = jnp.minimum(x0 + 1, Win - 1)
    wy = (ys - y0.astype(jnp.float32))[None, None, :, None]
    wx = (xs - x0.astype(jnp.float32))[None, None, None, :]
    top, bot = x[:, :, y0, :], x[:, :, y1, :]
    tl, tr = top[:, :, :, x0], top[:, :, :, x1]
    bl, br = bot[:, :, :, x0], bot[:, :, :, x1]
    t = tl * (1 - wx) + tr * wx
    b_ = bl * (1 - wx) + br * wx
    return t * (1 - wy) + b_ * wy


def hard_sample_indices_np(predict, label, prob_gt):
    # TODO(synk): dynamic-shape sampling (unique/nonzero/argsort selection) has no
    # static Pallas equivalent; run on host from tiny [B,N] arrays, return indices.
    B, _ = label.shape
    hard_sample_classes, total_classes = [], 0
    for i in range(B):
        lbl = label[i]
        classes = [int(c) for c in np.unique(lbl) if int(c) != IGNORE_INDEX]
        classes = [c for c in classes if int(np.sum(lbl == c)) > THRESHOLD]
        hard_sample_classes.append(classes)
        total_classes += len(classes)
    if total_classes == 0:
        return None, None, None
    n_view = min(MAX_SAMPLE // total_classes, THRESHOLD)
    b_list, n_list, lab_list = [], [], []
    for i in range(B):
        lbl, pred, p = label[i], predict[i], prob_gt[i]
        for cls_id in hard_sample_classes[i]:
            hard_idx = np.nonzero((lbl == cls_id) & (pred != cls_id))[0]
            easy_idx = np.nonzero((lbl == cls_id) & (pred == cls_id))[0]
            num_hard, num_easy = hard_idx.shape[0], easy_idx.shape[0]
            if num_hard >= n_view / 2 and num_easy >= n_view / 2:
                num_hard_keep = n_view // 2
                num_easy_keep = n_view - num_hard_keep
            elif num_hard >= n_view / 2:
                num_easy_keep = num_easy
                num_hard_keep = n_view - num_easy_keep
            elif num_easy >= n_view / 2:
                num_hard_keep = num_hard
                num_easy_keep = n_view - num_hard_keep
            else:
                num_hard_keep = num_hard
                num_easy_keep = num_easy
            order_h = np.argsort(-p[hard_idx], kind="stable")
            hard_sel = hard_idx[order_h[:num_hard_keep]]
            order_e = np.argsort(p[easy_idx], kind="stable")
            easy_sel = easy_idx[order_e[:num_easy_keep]]
            idx = np.concatenate([hard_sel, easy_sel], axis=0)
            b_list.append(np.full(idx.shape, i, np.int32))
            n_list.append(idx.astype(np.int32))
            lab_list.append(lbl[idx].astype(np.int32))
    return (np.concatenate(b_list), np.concatenate(n_list), np.concatenate(lab_list))


# ---------------------------------------------------------------------------
# Forward pass
# ---------------------------------------------------------------------------
def contrast_loss_forward(proj_feats, seg_logits, groundtruth, proj_masks):
    B, C, H, W = proj_feats.shape
    N = H * W
    num_masks = len(proj_masks)
    K = num_masks - 1

    # groundtruth -> nearest resize -> [B, N]
    gt = nearest_interp(groundtruth.astype(jnp.float32), H, W).astype(jnp.int32)
    gt = gt.reshape(B, N)

    # proj_masks: batched lane-dense L2-norm (one pallas_call), bilinear upsample
    Bm, Cm, Hm, Wm = proj_masks[0].shape
    masks = jnp.stack(proj_masks, axis=0)                          # [K+1, B, Cm, Hm, Wm]
    masks = masks.reshape(num_masks * Bm, Cm, Hm * Wm)
    masks = l2_normalize_channels(masks)                           # Pallas
    masks = masks.reshape(num_masks * Bm, Cm, Hm, Wm)
    masks = bilinear_align_corners(masks, H, W)
    masks = masks.reshape(num_masks, B, Cm, N)                     # [K+1, B, Cm, N]
    anchor_mask_cn = masks[-1]                                     # [B, Cm, N]
    key_mask_cn = masks[:-1]                                       # [K, B, Cm, N]

    # seg_logits: lane-dense softmax -> argmax + prob-at-gt-class (Pallas)
    Cls = seg_logits.shape[1]
    prob_gt, predict = softmax_argmax_gt(seg_logits.reshape(B, Cls, N), gt)

    # proj_feats: lane-dense channel L2 normalize (Pallas) -> [B, C, N]
    feat_cn = l2_normalize_channels(proj_feats.reshape(B, C, N))

    # host mining on tiny [B,N] arrays only; returns flat indices + labels
    sel = hard_sample_indices_np(np.asarray(predict), np.asarray(gt), np.asarray(prob_gt))
    if sel[0] is None:
        zero_f = jnp.mean(feat_cn) * 0.0
        zero_m = jnp.mean(masks) * 0.0
        return {"loss_feat_contrast": zero_f, "loss_mask_contrast": zero_m}

    b_idx = jnp.asarray(sel[0])
    n_idx = jnp.asarray(sel[1])
    labels = jnp.asarray(sel[2], dtype=jnp.int32)

    # device-side gathers (no full-tensor host round-trip)
    features = feat_cn[b_idx, :, n_idx]                            # [M, C]
    mask_anchors = anchor_mask_cn[b_idx, :, n_idx]                 # [M, Cm]
    mask_keys = key_mask_cn[:, b_idx, :, n_idx]                    # [M, K, Cm]

    loss_feat = feat_contrastive(features, labels)
    loss_mask = mask_contrastive(mask_anchors, mask_keys, labels)
    return {"loss_feat_contrast": loss_feat, "loss_mask_contrast": loss_mask}


if __name__ == "__main__":
    key = jax.random.PRNGKey(0)
    B, C, H, W = 2, 16, 16, 16     # proj feature map
    Cls = 4                        # seg classes
    Cm, Hm, Wm = 8, 8, 8           # projection masks (upsampled bilinearly to HxW)
    Hg, Wg = 32, 32                # groundtruth resolution (nearest-downsampled)

    k1, k2, k3, k4, k5 = jax.random.split(key, 5)
    proj_feats = jax.random.normal(k1, (B, C, H, W), jnp.float32)
    seg_logits = jax.random.normal(k2, (B, Cls, H, W), jnp.float32)
    proj_masks = [jax.random.normal(kk, (B, Cm, Hm, Wm), jnp.float32) for kk in (k3, k4, k5)]

    gt = np.zeros((B, 1, Hg, Wg), dtype=np.int32)
    gt[0, 0, :Hg // 2, :] = 0
    gt[0, 0, Hg // 2:, :] = 1
    gt[1, 0, :, :Wg // 2] = 2
    gt[1, 0, :, Wg // 2:] = 3
    gt[1, 0, :4, :4] = IGNORE_INDEX
    groundtruth = jnp.asarray(gt)

    losses = contrast_loss_forward(proj_feats, seg_logits, groundtruth, proj_masks)
    jax.block_until_ready(losses["loss_feat_contrast"])
    jax.block_until_ready(losses["loss_mask_contrast"])
    print("KERNEL_OK")
</pallas_src>

<mosaic_0001>
module attributes {stable_mosaic.version = 11 : i64} {
  func.func @_l2norm_kernel(%arg0: i32, %arg1: i32, %arg2: memref<1x8x64xf32, #tpu.memory_space<vmem>>, %arg3: memref<1x8x64xf32, #tpu.memory_space<vmem>>) attributes {dimension_semantics = [#tpu.dimension_semantics<parallel>, #tpu.dimension_semantics<parallel>], iteration_bounds = array<i64: 6, 1>, scalar_prefetch = 0 : i64, scratch_operands = 0 : i64, tpu.core_type = #tpu.core_type<tc>, window_params = [{transform_indices = @transform_0, window_bounds = array<i64: 1, 8, 64>}, {transform_indices = @transform_1, window_bounds = array<i64: 1, 8, 64>}]} {
    %c0 = arith.constant 0 : index
    %c0_0 = arith.constant 0 : index
    %c0_1 = arith.constant 0 : index
    %0 = vector.load %arg2[%c0, %c0_0, %c0_1] : memref<1x8x64xf32, #tpu.memory_space<vmem>>, vector<1x8x64xf32>
    %1 = vector.shape_cast %0 : vector<1x8x64xf32> to vector<8x64xf32>
    %2 = arith.mulf %1, %1 : vector<8x64xf32>
    %cst = arith.constant dense<0.000000e+00> : vector<64xf32>
    %3 = vector.multi_reduction <add>, %2, %cst [0] : vector<8x64xf32> to vector<64xf32>
    %4 = vector.shape_cast %3 : vector<64xf32> to vector<1x64xf32>
    %cst_2 = arith.constant 1.000000e-24 : f32
    %5 = vector.broadcast %cst_2 : f32 to vector<1x64xf32>
    %6 = arith.maximumf %4, %5 : vector<1x64xf32>
    %7 = math.rsqrt %6 : vector<1x64xf32>
    %8 = vector.broadcast %7 : vector<1x64xf32> to vector<8x64xf32>
    %9 = arith.mulf %1, %8 : vector<8x64xf32>
    %c0_3 = arith.constant 0 : index
    %c0_4 = arith.constant 0 : index
    %c0_5 = arith.constant 0 : index
    %10 = vector.load %arg3[%c0_3, %c0_4, %c0_5] : memref<1x8x64xf32, #tpu.memory_space<vmem>>, vector<1x8x64xf32>
    %11 = vector.shape_cast %10 : vector<1x8x64xf32> to vector<8x64xf32>
    %12 = vector.shape_cast %9 : vector<8x64xf32> to vector<1x8x64xf32>
    tpu.vector_store %arg3[%c0_3, %c0_4, %c0_5], %12 {strides = array<i32>} : memref<1x8x64xf32, #tpu.memory_space<vmem>>, vector<1x8x64xf32>,
    return
  }
  func.func @transform_0(%arg0: i32, %arg1: i32) -> (i32, i32, i32) {
    %c0_i32 = arith.constant 0 : i32
    %c0_i32_0 = arith.constant 0 : i32
    return %arg0, %c0_i32, %arg1 : i32, i32, i32
  }
  func.func @transform_1(%arg0: i32, %arg1: i32) -> (i32, i32, i32) {
    %c0_i32 = arith.constant 0 : i32
    %c0_i32_0 = arith.constant 0 : i32
    return %arg0, %c0_i32, %arg1 : i32, i32, i32
  }
}

</mosaic_0001>

<bundles_post_ra>
// kernel: tpu_custom_call.1
= control target key start
LH: loop header
LB: loop body
LE: loop exit
PB: predicated region body
PF: predicated region fallthrough
CT: control target
= control target key end

     0   :  { %6 = vsyncpa [#allocation3], 0  ;;  %s591_s0 = inlined_call_operand.hbm [shape: f32[6,8,64], index: 0, kind: input, shape index: {}]   ;;  %s592_s1 = inlined_call_operand.hbm [shape: f32[6,8,64], index: 1, kind: output, shape index: {}]  }
   0x1   :  { %8 = vsyncpa [#allocation3 + $0x1], 0 }
   0x2   :  { %9 = vsyncpa [#allocation4], 0 }
   0x3   :  { %11 = vsyncpa [#allocation4 + $0x1], 0  ;;  %s457_s6 = smov 0   ;;  %s459_s7 = smov 0  }
   0x4   :  { %s461_s8 = smov 0   ;;  %s463_s9 = smov 0  }
   0x5   :  { %s465_s10 = smov 0   ;;  %s467_s11 = smov 0  }
   0x6 LB: > { %s258_s12 = sadd.s32 4294967295, %s443_s11   ;;  %s259_s13 = sadd.s32 4294967294, %s443_s11   ;;  %s443_s11 = sphi %s467_s11, %s17_s11   ;;  %s439_s10 = sphi %s465_s10, %s603_s10   ;;  %s435_s9 = sphi %s463_s9, %s602_s9   ;;  %s431_s8 = sphi %s461_s8, %s601_s8   ;;  %s427_s7 = sphi %s459_s7, %s600_s7   ;;  %s423_s6 = sphi %s457_s6, %s599_s6  }
   0x7   : > { %s29_s14 = sadd.s32 1, %s439_s10  ;;  %s38_s15 = sadd.s32 1, %s431_s8 }
   0x8   : > { %p31_p0 = scmp.ge.s32.totalorder %s29_s14, 6  ;;  %p45_p1 = scmp.ne.s32.totalorder %s431_s8, %s427_s7 }
   0x9   : > { %p46_p2 = scmp.eq.s32.totalorder %s443_s11, 0  ;;  %p51_p3 = scmp.ne.s32.totalorder %s427_s7, %s423_s6 }
   0xa   : > { %s605_s14 = smov (%p31_p0, %s29_s14), 0  ;;  %p52_p5 = scmp.eq.s32.totalorder %s258_s12, 0 }
   0xb   : > { %p498_p4 = por %p46_p2, %p45_p1  ;;  %s33_s17 = ssub.s32 %s439_s10, %s605_s14 }
   0xc   : > { %p77_p6 = scmp.eq.s32.totalorder %s258_s12, 5  ;;  %p36_p7 = scmp.eq.s32.totalorder %s33_s17, 0 }
   0xd   : > { %p504_p8 = por %p52_p5, %p51_p3  ;;  %p83_p10 = scmp.eq.s32.totalorder %s259_s13, 5 }
   0xe   : > { %p508_p9 = por %p77_p6, %p45_p1  ;;  %p283_p12 = scmp.lt.s32.totalorder %s443_s11, 6 }
   0xf   : > { %s513_s20 = scalar_select %p36_p7, %s431_s8, %s38_s15  }
  0x10   : > { %p515_p11 = por %p83_p10, %p51_p3  ;;  %s103_s22 = sand.u32 1, %s431_s8  }
  0x11   : > { %s262_s23 = sshll.u32 %s103_s22, 3  ;;  %s263_s24 = sshll.u32 %s439_s10, 7 }
  0x12   : > { %s596_s21 = scalar_select %p515_p11, 1, 0 }
  0x13   : > { %s113_s27 = scalar_lea.hbm %s591_s0, %s263_s24  ;;  %s107_s28 = scalar_lea.vmem [#allocation2], %s262_s23 }
  0x14   : > { %s115_s29 = sshll.u32 %s107_s28, 4  ;;  %p527_p13 = pnand %p283_p12, %p498_p4  ;;  %s116_s29 = int_to_ptr.vmem [resolvable:$true] %s115_s29 }
  0x15   : > { %p264_p0 = scmp.ge.s32.totalorder %s443_s11, 1  ;;  %p120_p1 = scmp.lt.s32.totalorder %s443_s11, 7 }
  0x16   : > { %s104_s2 = scalar_lea.sflag [#allocation3], %s103_s22  ;;  %p337_p2 = pneg %p527_p13 }
  0x17   : > { %s348_s3 = scalar_lea.vmem %s116_s29, 128  ;;  %s445_s4 = smov [#allocation2]  }
  0x18   : > { %p349_p3 = scmp.ne.s32.totalorder %s116_s29, %s348_s3  ;;  %s353_s5 = sshll.u32 %s445_s4, 4  ;;  %s354_s5 = int_to_ptr.vmem [resolvable:$false] %s353_s5 }
  0x19   : > { %s355_s12 = scalar_lea.vmem %s354_s5, 256  ;;  %p356_p7 = scmp.lt.s32.totalorder %s116_s29, %s354_s5 }
  0x1a   : > { %p351_p5 = pnand %p349_p3, %p337_p2  ;;  %p357_p10 = scmp.lt.s32.totalorder %s355_s12, %s348_s3 }
  0x1c   : > { %p352_p6 = pneg %p351_p5  ;;  %p358_p4 = por %p357_p10, %p356_p7 }
  0x1e   : > { %p359_p12 = pnand %p358_p4, %p352_p6 }
  0x20   : > { %362 = shalt.err (!%p359_p12)
}
  0x21   : > { %278 = dma.hbm_to_vmem [thread:$0]  (!%p527_p13), %s113_s27, 128, %s116_s29, %s104_s2  }
  0x22   : > { %p121_p11 = pnand %p264_p0, %p120_p1 }
  0x23   : > { %s542_s13 = sand.u32 (!%p121_p11), 1, %s427_s7  }
  0x24   : > { %124 = sbr.rel (%p121_p11) target bundleno = 89 (0x59), region = 24  ;;  %s265_s15 = sshll.u32 (!%p121_p11), %s542_s13, 3 }
  0x25   : > { %s127_s16 = scalar_lea.sflag (!%p121_p11), [#allocation3], %s542_s13  ;;  %s130_s17 = scalar_lea.vmem (!%p121_p11), [#allocation2], %s265_s15 }
  0x29   : > { %414 = dma.done.wait (%p504_p8), %s127_s16, 128  }
  0x2a   : > { %416 = vsyncadd (%p504_p8), %s127_s16, 4294967168  ;;  %v149_v0 = vld [vmem:[%s130_s17] sm:$0xff]  ;;  %vm151_vm0 = vcmask 523264   ;;  %s148_s22 = scalar_lea.vmem [#allocation5], %s265_s15  ;;  %s268_s18 = sshll.u32 %s435_s9, 7 }
  0x2b   : > { %v150_v1 = vmul.f32 %v149_v0, %v149_v0  ;;  %s178_s23 = sshll.u32 %s148_s22, 4  ;;  %s176_s26 = scalar_lea.hbm %s592_s1, %s268_s18  ;;  %s179_s23 = int_to_ptr.vmem [resolvable:$true] %s178_s23 }
  0x2c   : > { %s164_s27 = scalar_lea.sflag [#allocation4], %s542_s13  ;;  %s363_s28 = scalar_lea.vmem %s179_s23, 128 }
  0x2d   : > { %v152_v2 = vsel %vm151_vm0, %v150_v1, 0.0  ;;  %p364_p8 = scmp.ne.s32.totalorder %s179_s23, %s363_s28  ;;  %s446_s29 = smov [#allocation5]  }
  0x2e   : > { %v153_v3 = vrot.slane %v152_v2, 4  ;;  %s367_s30 = sshll.u32 %s446_s29, 4  ;;  %s368_s30 = int_to_ptr.vmem [resolvable:$false] %s367_s30 }
  0x2f   : > { %p365_p11 = pnand %p364_p8, %p508_p9  ;;  %s369_s2 = scalar_lea.vmem %s368_s30, 256 }
  0x30   : > { %v154_v4 = vadd.f32 %v153_v3, %v152_v2  ;;  %p370_p0 = scmp.lt.s32.totalorder %s179_s23, %s368_s30  ;;  %p371_p1 = scmp.lt.s32.totalorder %s369_s2, %s363_s28 }
  0x31   : > { %p366_p13 = pneg %p365_p11 }
  0x32   : > { %v155_v5 = vrot.slane %v154_v4, 2  ;;  %p372_p2 = por %p371_p1, %p370_p0 }
  0x34   : > { %v156_v6 = vadd.f32 %v155_v5, %v154_v4  ;;  %p373_p3 = pnand %p372_p2, %p366_p13 }
  0x36   : > { %v157_v7 = vrot.slane %v156_v6, 1 }
  0x38   : > { %v158_v8 = vadd.f32 %v157_v7, %v156_v6 }
  0x3a   : > { %v159_v9 = vmax.f32 %v158_v8, 1e-24 }
  0x3c   : > { %333 = vrsqrt.f32 %v159_v9 }
  0x49   : > { %v334_v10 = vpop.eup %333 }
  0x4a   : > { %v161_v11 = vmul.f32 %v334_v10, %v149_v0 }
  0x4c   : > { %162 = vst.msk [vmem:[%s148_s22] sm:$0xff] %vm151_vm0, %v161_v11 }
  0x4d   : > { %376 = shalt.err (!%p373_p3)
}
  0x4e   : > { %s377_s9 = scalar_lea.hbm %s176_s26, 128  ;;  %s381_s5 = scalar_lea.hbm %s592_s1, 768 }
  0x4f   : > { %p378_p5 = scmp.ne.s32.totalorder %s176_s26, %s377_s9  ;;  %p382_p10 = scmp.lt.s32.totalorder %s176_s26, %s592_s1 }
  0x50   : > { %p383_p4 = scmp.lt.s32.totalorder %s381_s5, %s377_s9 }
  0x51   : > { %p379_p6 = pnand %p378_p5, %p508_p9 }
  0x52   : > { %p384_p12 = por %p383_p4, %p382_p10 }
  0x53   : > { %p380_p7 = pneg %p379_p6 }
  0x55   : > { %p385_p8 = pnand %p384_p12, %p380_p7 }
  0x57   : > { %388 = shalt.err (!%p385_p8)
}
  0x58   : > { %273 = dma.vmem_to_hbm [thread:$0]  (%p508_p9), %s179_s23, 128, %s176_s26, %s164_s27  }
  0x59 PF: > { %p284_p11 = scmp.ge.s32.totalorder %s443_s11, 2  ;;  %s190_s15 = sand.u32 1, %s423_s6  }
  0x5a   : > { %p598_p13 = scmp.ne.s32.totalorder %s596_s21, 0  ;;  %s191_s16 = scalar_lea.sflag [#allocation4], %s190_s15 }
  0x5c   : > { %p280_p0 = pnand %p284_p11, %p598_p13 }
  0x5e   : > { %p281_p1 = pneg %p280_p0 }
  0x60   : > { %418 = dma.done.wait (%p281_p1), %s191_s16, 128  }
  0x61   : > { %420 = vsyncadd (%p281_p1), %s191_s16, 4294967168  ;;  %s17_s11 = sadd.s32 1, %s443_s11   ;;  %s599_s6 = smov %s427_s7 }
  0x62   : > { %p14_p2 = scmp.ge.s32.totalorder %s17_s11, 8   ;;  %s600_s7 = smov %s431_s8 }
  0x63   : > { %s601_s8 = smov %s513_s20  ;;  %s602_s9 = smov %s439_s10 }
  0x64   : > { %s603_s10 = smov %s605_s14  ;;  %16 = sbr.rel (!%p14_p2) target bundleno = 6 (0x6), region = 69 }
  0x69   :  { %196 = vsyncpa [#allocation3], 1 }
  0x6a   :  { %198 = vsyncpa [#allocation3 + $0x1], 1 }
  0x6b   :  { %199 = vsyncpa [#allocation4], 1 }
  0x6c   :  { %201 = vsyncpa [#allocation4 + $0x1], 1 }

</bundles_post_ra>
